<compile_context>
chip_gen: v7x
topology: tpu7x:2x2x1
jax: 0.10.0
libtpu: 0.0.40
codegen_flags: <defaults>
</compile_context>

<pallas_src>
import functools

import jax
import jax.numpy as jnp
from jax.experimental import pallas as pl
from jax.experimental.pallas import tpu as pltpu

_LANE = 128


def _round_up(x, m):
    return (x + m - 1) // m * m


def _pick_hw_tile(hw, max_tile):
    t = min(max_tile, _round_up(hw, _LANE))
    return t, _round_up(hw, t)


# ----------------------------------------------------------------------------
# ImageNet normalization: ((x+1)/2 - mean) / std, lane-dense over HW
# ----------------------------------------------------------------------------

def _normalize_kernel(x_ref, scale_ref, shift_ref, o_ref):
    # x_ref: (1, C, HW); scale/shift: (C, 1)
    o_ref[0] = x_ref[0] * scale_ref[...] + shift_ref[...]


def normalize_imagenet(x, mean, std):
    B, C, H, W = x.shape
    hw = H * W
    scale = (0.5 / std).reshape(C, 1).astype(jnp.float32)
    shift = ((0.5 - mean) / std).reshape(C, 1).astype(jnp.float32)
    xf = x.reshape(B, C, hw)
    y = pl.pallas_call(
        _normalize_kernel,
        out_shape=jax.ShapeDtypeStruct((B, C, hw), jnp.float32),
        grid=(B,),
        in_specs=[
            pl.BlockSpec((1, C, hw), lambda b: (b, 0, 0)),
            pl.BlockSpec((C, 1), lambda b: (0, 0)),
            pl.BlockSpec((C, 1), lambda b: (0, 0)),
        ],
        out_specs=pl.BlockSpec((1, C, hw), lambda b: (b, 0, 0)),
        compiler_params=pltpu.CompilerParams(dimension_semantics=("parallel",)),
    )(xf, scale, shift)
    return y.reshape(B, C, H, W)


# ----------------------------------------------------------------------------
# 3x3 / pad=1 conv (PyTorch semantics): bf16 im2col matmul, HW-tiled,
# lane-dense (Cout, TILE_HW) output, fused bias + ReLU.
# ----------------------------------------------------------------------------

def _conv_mm_kernel(x_ref, w_ref, b_ref, o_ref, *, apply_relu):
    # x_ref: (1, Kp, T) bf16 patches; w_ref: (Cout, Kp) bf16; b_ref: (Cout, 1) f32
    y = jnp.dot(w_ref[...], x_ref[0], preferred_element_type=jnp.float32)
    y = y + b_ref[...]
    if apply_relu:
        y = jnp.maximum(y, 0.0)
    o_ref[0] = y  # (Cout, T) lane-dense store


def conv3x3(x_nchw, w, b, apply_relu, max_tile_hw=1024):
    B, Cin, H, W = x_nchw.shape
    Cout = w.shape[0]
    hw = H * W
    K = Cin * 9
    Kp = _round_up(K, 8)  # pad contraction dim (27 -> 32 for the first layer)

    # im2col in (B, K, HW) layout: 9 strided slices + stack, no transposes,
    # cast to bf16 to halve HBM traffic and double MXU rate.
    # TODO(synk): remaining host-side im2col still costs ~9x activation bytes
    # (bf16); an in-kernel 9-tap halo accumulation would remove it entirely.
    xp = jnp.pad(x_nchw, ((0, 0), (0, 0), (1, 1), (1, 1)))
    taps = [xp[:, :, dy:dy + H, dx:dx + W] for dy in range(3) for dx in range(3)]
    pat = jnp.stack(taps, axis=2).reshape(B, K, hw).astype(jnp.bfloat16)

    T, hwp = _pick_hw_tile(hw, max_tile_hw)
    if Kp != K or hwp != hw:
        pat = jnp.pad(pat, ((0, 0), (0, Kp - K), (0, hwp - hw)))

    wmat = w.reshape(Cout, K).astype(jnp.bfloat16)  # (Cout, Cin*9), c-major/tap-minor
    if Kp != K:
        wmat = jnp.pad(wmat, ((0, 0), (0, Kp - K)))
    bmat = b.reshape(Cout, 1).astype(jnp.float32)

    y = pl.pallas_call(
        functools.partial(_conv_mm_kernel, apply_relu=apply_relu),
        out_shape=jax.ShapeDtypeStruct((B, Cout, hwp), jnp.float32),
        grid=(B, hwp // T),
        in_specs=[
            pl.BlockSpec((1, Kp, T), lambda i, j: (i, 0, j)),
            pl.BlockSpec((Cout, Kp), lambda i, j: (0, 0)),
            pl.BlockSpec((Cout, 1), lambda i, j: (0, 0)),
        ],
        out_specs=pl.BlockSpec((1, Cout, T), lambda i, j: (i, 0, j)),
        compiler_params=pltpu.CompilerParams(
            dimension_semantics=("parallel", "parallel")),
    )(pat, wmat, bmat)
    if hwp != hw:
        y = y[:, :, :hw]
    return y.reshape(B, Cout, H, W)


# ----------------------------------------------------------------------------
# Gram matrix: G[b] = f @ f.T / (H*W*C), accumulated over HW tiles
# ----------------------------------------------------------------------------

def _gram_kernel(f_ref, o_ref, acc_ref, *, scale):
    k = pl.program_id(1)

    @pl.when(k == 0)
    def _():
        acc_ref[...] = jnp.zeros_like(acc_ref)

    f = f_ref[0]  # (C, T)
    acc_ref[...] += jax.lax.dot_general(
        f, f, dimension_numbers=(((1,), (1,)), ((), ())),
        preferred_element_type=jnp.float32)

    @pl.when(k == pl.num_programs(1) - 1)
    def _():
        o_ref[0] = acc_ref[...] * scale


def compute_gram(feat_nchw, max_tile_hw=2048):
    B, C, H, W = feat_nchw.shape
    hw = H * W
    f = feat_nchw.reshape(B, C, hw)
    T, hwp = _pick_hw_tile(hw, max_tile_hw)
    if hwp != hw:
        f = jnp.pad(f, ((0, 0), (0, 0), (0, hwp - hw)))  # zero cols add nothing
    scale = 1.0 / float(H * W * C)
    return pl.pallas_call(
        functools.partial(_gram_kernel, scale=scale),
        out_shape=jax.ShapeDtypeStruct((B, C, C), jnp.float32),
        grid=(B, hwp // T),
        in_specs=[pl.BlockSpec((1, C, T), lambda b, k: (b, 0, k))],
        out_specs=pl.BlockSpec((1, C, C), lambda b, k: (b, 0, 0)),
        scratch_shapes=[pltpu.VMEM((C, C), jnp.float32)],
        compiler_params=pltpu.CompilerParams(
            dimension_semantics=("parallel", "arbitrary")),
    )(f)


# ----------------------------------------------------------------------------
# mean(|a-b|) / mean((a-b)^2): streamed tiled reduction
# ----------------------------------------------------------------------------

def _reduce_loss_kernel(a_ref, b_ref, o_ref, *, squared):
    @pl.when(pl.program_id(0) == 0)
    def _():
        o_ref[...] = jnp.zeros_like(o_ref)

    d = a_ref[0] - b_ref[0]  # (TILE_ROWS, 128)
    v = d * d if squared else jnp.abs(d)
    o_ref[...] += jnp.sum(v, keepdims=True)


def mean_loss(a, b, squared=False, max_tile_rows=512):
    n = a.size
    rows = -(-n // _LANE)
    tr = max(8, min(max_tile_rows, _round_up(rows, 8)))
    chunk = tr * _LANE
    npad = _round_up(n, chunk)
    a1 = a.reshape(-1)
    b1 = b.reshape(-1)
    if npad != n:
        a1 = jnp.pad(a1, (0, npad - n))  # identical zero pads -> diff == 0
        b1 = jnp.pad(b1, (0, npad - n))
    nt = npad // chunk
    a3 = a1.reshape(nt, tr, _LANE)
    b3 = b1.reshape(nt, tr, _LANE)
    s = pl.pallas_call(
        functools.partial(_reduce_loss_kernel, squared=squared),
        out_shape=jax.ShapeDtypeStruct((1, 1), jnp.float32),
        grid=(nt,),
        in_specs=[pl.BlockSpec((1, tr, _LANE), lambda i: (i, 0, 0)),
                  pl.BlockSpec((1, tr, _LANE), lambda i: (i, 0, 0))],
        out_specs=pl.BlockSpec((1, 1), lambda i: (0, 0)),
        compiler_params=pltpu.CompilerParams(dimension_semantics=("arbitrary",)),
    )(a3, b3)
    return s[0, 0] / float(n)


# ----------------------------------------------------------------------------
# VGG19-features sub-model (deterministic synthetic weights, not pretrained)
# ----------------------------------------------------------------------------

_VGG19_FEATURES = [
    ("conv", 3, 64), ("relu",), ("conv", 64, 64), ("relu",), ("pool",),
    ("conv", 64, 128), ("relu",), ("conv", 128, 128), ("relu",), ("pool",),
]


class L1PlusPerceptualStyleLoss:
    def __init__(self, lambda_style, lambda_perceptual, perceptual_layers,
                 percep_is_l1, key):
        self.lambda_style = float(lambda_style)
        self.lambda_perceptual = float(lambda_perceptual)
        self.percep_is_l1 = percep_is_l1
        self.layers = _VGG19_FEATURES[:perceptual_layers + 1]

        # Deterministic synthetic weights (He scaling) stand in for pretrained VGG19.
        self.params = []
        for spec in self.layers:
            if spec[0] == "conv":
                _, cin, cout = spec
                key, kw, kb = jax.random.split(key, 3)
                w = jax.random.normal(kw, (cout, cin, 3, 3), jnp.float32)
                w = w * (2.0 / (cin * 9)) ** 0.5
                b = 0.01 * jax.random.normal(kb, (cout,), jnp.float32)
                self.params.append((w, b))
            else:
                self.params.append(None)

        self.mean = jnp.array([0.485, 0.456, 0.406], jnp.float32)
        self.std = jnp.array([0.229, 0.224, 0.225], jnp.float32)

    def _vgg_submodel(self, x):
        i, n = 0, len(self.layers)
        while i < n:
            kind = self.layers[i][0]
            if kind == "conv":
                w, b = self.params[i]
                fuse_relu = (i + 1 < n) and (self.layers[i + 1][0] == "relu")
                x = conv3x3(x, w, b, apply_relu=fuse_relu)
                i += 2 if fuse_relu else 1
            elif kind == "relu":
                x = jnp.maximum(x, 0.0)  # standalone ReLU (rare path)
                i += 1
            else:  # pool
                # TODO(synk): 2x2 max-pool left in plain JAX (only reached for
                # perceptual_layers >= 4).
                B, C, H, W = x.shape
                x = x.reshape(B, C, H // 2, 2, W // 2, 2).max(axis=(3, 5))
                i += 1
        return x

    def __call__(self, inputs, targets):
        if self.lambda_style == 0.0 and self.lambda_perceptual == 0.0:
            z = jnp.zeros((), jnp.float32)
            return z, z, z

        B = inputs.shape[0]
        # Run fake & real through normalize + VGG in one batched (2B) pass.
        both = jnp.concatenate([inputs, targets], axis=0)
        both = normalize_imagenet(both, self.mean, self.std)
        feats = self._vgg_submodel(both)
        fake_feat, real_feat = feats[:B], feats[B:]

        squared = (self.percep_is_l1 != 1)
        loss_perceptual = mean_loss(fake_feat, real_feat, squared=squared) \
            * self.lambda_perceptual

        grams = compute_gram(feats)
        loss_style = mean_loss(grams[:B], grams[B:], squared=False) \
            * self.lambda_style

        loss = loss_style + loss_perceptual
        return loss, loss_style, loss_perceptual


# ----------------------------------------------------------------------------
# Demo
# ----------------------------------------------------------------------------

if __name__ == "__main__":
    key = jax.random.PRNGKey(0)
    k_in, k_tg, k_par = jax.random.split(key, 3)

    B, C, H, W = 2, 3, 16, 16  # images in [-1, 1], NCHW
    inputs = jax.random.uniform(k_in, (B, C, H, W), jnp.float32, -1.0, 1.0)
    targets = jax.random.uniform(k_tg, (B, C, H, W), jnp.float32, -1.0, 1.0)

    model = L1PlusPerceptualStyleLoss(
        lambda_style=500.0,
        lambda_perceptual=0.5,
        perceptual_layers=3,   # VGG19 features: conv(3->64), ReLU, conv(64->64), ReLU
        percep_is_l1=1,
        key=k_par,
    )

    loss, loss_style, loss_perceptual = model(inputs, targets)
    jax.block_until_ready((loss, loss_style, loss_perceptual))
    print("KERNEL_OK")
</pallas_src>

<mosaic_0001>
module attributes {stable_mosaic.version = 11 : i64} {
  func.func @_normalize_kernel(%arg0: i32, %arg1: memref<1x3x256xf32, #tpu.memory_space<vmem>>, %arg2: memref<3x1xf32, #tpu.memory_space<vmem>>, %arg3: memref<3x1xf32, #tpu.memory_space<vmem>>, %arg4: memref<1x3x256xf32, #tpu.memory_space<vmem>>) attributes {dimension_semantics = [#tpu.dimension_semantics<parallel>], iteration_bounds = array<i64: 4>, scalar_prefetch = 0 : i64, scratch_operands = 0 : i64, tpu.core_type = #tpu.core_type<tc>, window_params = [{transform_indices = @transform_0, window_bounds = array<i64: 1, 3, 256>}, {pipeline_mode = #tpu.pipeline_mode<synchronous>, transform_indices = @transform_1, window_bounds = array<i64: 3, 1>}, {pipeline_mode = #tpu.pipeline_mode<synchronous>, transform_indices = @transform_2, window_bounds = array<i64: 3, 1>}, {transform_indices = @transform_3, window_bounds = array<i64: 1, 3, 256>}]} {
    %c0 = arith.constant 0 : index
    %c0_0 = arith.constant 0 : index
    %c0_1 = arith.constant 0 : index
    %0 = vector.load %arg1[%c0, %c0_0, %c0_1] : memref<1x3x256xf32, #tpu.memory_space<vmem>>, vector<1x3x256xf32>
    %1 = vector.shape_cast %0 : vector<1x3x256xf32> to vector<3x256xf32>
    %c0_2 = arith.constant 0 : index
    %c0_3 = arith.constant 0 : index
    %2 = vector.load %arg2[%c0_2, %c0_3] : memref<3x1xf32, #tpu.memory_space<vmem>>, vector<3x1xf32>
    %3 = vector.broadcast %2 : vector<3x1xf32> to vector<3x256xf32>
    %4 = arith.mulf %1, %3 : vector<3x256xf32>
    %c0_4 = arith.constant 0 : index
    %c0_5 = arith.constant 0 : index
    %5 = vector.load %arg3[%c0_4, %c0_5] : memref<3x1xf32, #tpu.memory_space<vmem>>, vector<3x1xf32>
    %6 = vector.broadcast %5 : vector<3x1xf32> to vector<3x256xf32>
    %7 = arith.addf %4, %6 : vector<3x256xf32>
    %c0_6 = arith.constant 0 : index
    %c0_7 = arith.constant 0 : index
    %c0_8 = arith.constant 0 : index
    %8 = vector.load %arg4[%c0_6, %c0_7, %c0_8] : memref<1x3x256xf32, #tpu.memory_space<vmem>>, vector<1x3x256xf32>
    %9 = vector.shape_cast %8 : vector<1x3x256xf32> to vector<3x256xf32>
    %10 = vector.shape_cast %7 : vector<3x256xf32> to vector<1x3x256xf32>
    tpu.vector_store %arg4[%c0_6, %c0_7, %c0_8], %10 {strides = array<i32>} : memref<1x3x256xf32, #tpu.memory_space<vmem>>, vector<1x3x256xf32>,
    return
  }
  func.func @transform_0(%arg0: i32) -> (i32, i32, i32) {
    %c0_i32 = arith.constant 0 : i32
    %c0_i32_0 = arith.constant 0 : i32
    %c0_i32_1 = arith.constant 0 : i32
    return %arg0, %c0_i32, %c0_i32_0 : i32, i32, i32
  }
  func.func @transform_1(%arg0: i32) -> (i32, i32) {
    %c0_i32 = arith.constant 0 : i32
    %c0_i32_0 = arith.constant 0 : i32
    %c0_i32_1 = arith.constant 0 : i32
    return %c0_i32, %c0_i32_0 : i32, i32
  }
  func.func @transform_2(%arg0: i32) -> (i32, i32) {
    %c0_i32 = arith.constant 0 : i32
    %c0_i32_0 = arith.constant 0 : i32
    %c0_i32_1 = arith.constant 0 : i32
    return %c0_i32, %c0_i32_0 : i32, i32
  }
  func.func @transform_3(%arg0: i32) -> (i32, i32, i32) {
    %c0_i32 = arith.constant 0 : i32
    %c0_i32_0 = arith.constant 0 : i32
    %c0_i32_1 = arith.constant 0 : i32
    return %arg0, %c0_i32, %c0_i32_0 : i32, i32, i32
  }
}

</mosaic_0001>

<bundles_post_ra>
// kernel: tpu_custom_call.1
= control target key start
LH: loop header
LB: loop body
LE: loop exit
PB: predicated region body
PF: predicated region fallthrough
CT: control target
= control target key end

     0   :  { %s310_s12 = smov 0   ;;  %s333_s0 = inlined_call_operand.vmem [shape: f32[4,3,256], index: 0, kind: input, shape index: {}]   ;;  %s334_s1 = inlined_call_operand.vmem [shape: f32[3,1], index: 1, kind: input, shape index: {}]   ;;  %s335_s2 = inlined_call_operand.vmem [shape: f32[3,1], index: 2, kind: input, shape index: {}]   ;;  %s336_s3 = inlined_call_operand.vmem [shape: f32[4,3,256], index: 3, kind: output, shape index: {}]  }
   0x1 LB: > { %s256_s13 = sadd.s32 4294967295, %s286_s12   ;;  %p260_p0 = scmp.ge.s32.totalorder %s286_s12, 1  ;;  %s286_s12 = sphi %s310_s12, %s13_s12  }
   0x2   : > { %p137_p1 = scmp.lt.s32.totalorder %s286_s12, 5 }
   0x4   : > { %p138_p2 = pnand %p260_p0, %p137_p1 }
   0x5   : > { %v172_v0 = vld [vmem:[%s334_s1] sm:$0x7] (!%p138_p2)  ;;  %v288_v1 = vmov (!%p138_p2), 0   ;;  %p161_p3 = scmp.lt.s32.totalorder (!%p138_p2), %s256_s13, 3  ;;  %v289_v3 = vmov (!%p138_p2), 839922192   ;;  %v180_v5 = vlaneseq (!%p138_p2) }
   0x6   : > { %141 = sbr.rel (%p138_p2) target bundleno = 144 (0x90), region = 32  ;;  %279 = vset.pattern.permute.xlu0 (!%p138_p2), %v288_v1  ;;  %v186_v2 = vld [vmem:[%s335_s2] sm:$0x7] (!%p138_p2)  ;;  %v178_v4 = vunpack.c.l.s4 (!%p138_p2), %v289_v3 }
   0x7   : > { %175 = vperm.xlu0 (!%p138_p2), %279, %v172_v0   ;;  %v181_v7 = vshrl.u32 (!%p138_p2), %v180_v5, 7 }
   0x8   : > { %v179_v6 = vunpack.c.0.s8 (!%p138_p2), %v178_v4 }
   0xa   : > { %v182_v8 = vsub.s32 (!%p138_p2), %v179_v6, %v181_v7 }
   0xb   : > { %189 = vperm.xlu0 (!%p138_p2), %279, %v186_v2  }
   0xd   : > { %s338_s13 = smov (!%p161_p3, %s256_s13), 3 }
   0xe   : > { %s267_s18 = sshll.u32 %s338_s13, 3 }
   0xf   : > { %s165_s21 = scalar_lea.vmem %s333_s0, %s267_s18  ;;  %s170_s24 = scalar_lea.vmem %s336_s3, %s267_s18 }
  0x10   : > { %v171_v11 = vld [vmem:[%s165_s21] sm:$0x77] }
  0x86   : > { %v176_v9 = vpop.permute.xlu0 %175 }
  0x87   : > { %v183_v10 = vrot.slane %v176_v9, %v182_v8 }
  0x89   : > { %v185_v13 = vmul.f32 %v183_v10, %v171_v11 }
  0x8a   : > { %v190_v12 = vpop.permute.xlu0 %189 }
  0x8b   : > { %v197_v14 = vrot.slane %v190_v12, %v182_v8 }
  0x8d   : > { %v199_v15 = vadd.f32 %v197_v14, %v185_v13 }
  0x8f   : > { %200 = vst [vmem:[%s170_s24] sm:$0x77] %v199_v15 }
  0x90 PF: > { %s13_s12 = sadd.s32 1, %s286_s12  }
  0x91   : > { %p10_p4 = scmp.ge.s32.totalorder %s13_s12, 6  }
  0x93   :  { %12 = sbr.rel (!%p10_p4) target bundleno = 1 (0x1), region = 62 }

</bundles_post_ra>
